<compile_context>
chip_gen: v6e
topology: v6e:2x2x1
jax: 0.10.0
libtpu: 0.0.40
codegen_flags: <defaults>
</compile_context>

<pallas_src>
import numpy as np
import jax
import jax.numpy as jnp
from jax.experimental import pallas as pl
from jax.experimental.pallas import tpu as pltpu


# ----------------------------- helpers --------------------------------------

def _round_up(a, m):
    return (a + m - 1) // m * m


def _cdiv(a, b):
    return (a + b - 1) // b


def _device_vmem_bytes():
    """Physical VMEM per TensorCore; conservative 64 MiB fallback (v7x)."""
    try:
        return int(pltpu.get_tpu_info().vmem_capacity_bytes)
    except Exception:
        return 64 * 1024 * 1024


def _block_spec(shape, index_map, *, buffers=None):
    """BlockSpec with optional explicit buffer count (graceful fallback)."""
    if buffers is not None and hasattr(pl, "Buffered"):
        try:
            return pl.BlockSpec(shape, index_map,
                                pipeline_mode=pl.Buffered(buffers))
        except TypeError:
            pass
    return pl.BlockSpec(shape, index_map)


# ----------------------------- kernels --------------------------------------

def _ffn_kernel_resident(x_ref, w1_ref, b1_ref, w2_ref, b2_ref, o_ref):
    # Full pf_dim resident in VMEM: one fused pass per M tile.
    h = jnp.dot(x_ref[...], w1_ref[...], preferred_element_type=jnp.float32)
    h = jnp.maximum(h + b1_ref[...], 0.0)           # bias + ReLU in f32 (VPU)
    # dropout: identity (eval mode)
    out = jnp.dot(h.astype(w2_ref.dtype), w2_ref[...],
                  preferred_element_type=jnp.float32) + b2_ref[...]
    o_ref[...] = out.astype(o_ref.dtype)


def _ffn_kernel_split(x_ref, w1_ref, b1_ref, w2_ref, b2_ref, o_ref, acc_ref):
    # pf_dim split across grid axis 1 ("arbitrary"); accumulate second matmul.
    p = pl.program_id(1)

    h = jnp.dot(x_ref[...], w1_ref[...], preferred_element_type=jnp.float32)
    h = jnp.maximum(h + b1_ref[...], 0.0)           # per-slice bias + ReLU
    partial = jnp.dot(h.astype(w2_ref.dtype), w2_ref[...],
                      preferred_element_type=jnp.float32)

    @pl.when(p == 0)
    def _():
        acc_ref[...] = partial

    @pl.when(p != 0)
    def _():
        acc_ref[...] += partial

    @pl.when(p == pl.num_programs(1) - 1)
    def _():
        o_ref[...] = (acc_ref[...] + b2_ref[...]).astype(o_ref.dtype)


# ----------------------------- wrapper --------------------------------------

def make_positionwise_ffn(w1, b1, w2, b2, *, compute_dtype=jnp.bfloat16,
                          tile_m_target=None, pf_tile=None):
    """Build an FFN apply(x) closure with weights prepped once.

    w1: [H, P], b1: [P], w2: [P, H], b2: [H]   (PyTorch W^T layout).
    compute_dtype: MXU operand dtype (bf16 default; f32 accumulation always).
    pf_tile: optional forced pf_dim tile (multiple of 128) for testing the
             accumulator path.
    """
    H, P = w1.shape
    assert w2.shape == (P, H) and b1.shape == (P,) and b2.shape == (H,)

    cdt = jnp.bfloat16 if compute_dtype is None else compute_dtype
    itemsize = np.dtype(cdt).itemsize

    Hp = _round_up(H, 128)
    if pf_tile is None:
        Pp = _round_up(P, 128)
        tile_p_fixed = None
    else:
        tile_p_fixed = _round_up(min(int(pf_tile), max(P, 128)), 128)
        Pp = _round_up(P, tile_p_fixed)

    # --- one-time weight prep (cast + lane padding); reused every call ------
    w1p = w1.astype(cdt)
    w2p = w2.astype(cdt)
    if (Hp, Pp) != (H, P):
        w1p = jnp.pad(w1p, ((0, Hp - H), (0, Pp - P)))
        w2p = jnp.pad(w2p, ((0, Pp - P), (0, Hp - H)))
    b1p = b1.astype(jnp.float32)
    b2p = b2.astype(jnp.float32)
    if Pp != P:
        b1p = jnp.pad(b1p, (0, Pp - P))
    if Hp != H:
        b2p = jnp.pad(b2p, (0, Hp - H))
    b1p = b1p.reshape(1, Pp)
    b2p = b2p.reshape(1, Hp)

    vmem_cap = _device_vmem_bytes()
    budget = int(vmem_cap * 0.70)        # what our own accounting may use
    limit_cap = int(vmem_cap * 0.90)     # never exceed physical VMEM
    if tile_m_target is None:
        # Larger tiles amortize grid overhead on 128 MiB parts (v5e/v6e);
        # keep the f32 intermediate small on 64 MiB v7x.
        tile_m_target_ = 512 if vmem_cap >= 96 * 1024 * 1024 else 256
    else:
        tile_m_target_ = int(tile_m_target)

    @jax.jit
    def apply(x):
        B, S, Hin = x.shape
        assert Hin == H
        M = B * S
        out_dtype = x.dtype
        out_itemsize = np.dtype(out_dtype).itemsize
        sublane_m = max(32 // itemsize, 32 // out_itemsize)

        # ---- M tiling: minimal zero-row padding, >=2 steps for megacore ----
        n_m = max(_cdiv(M, tile_m_target_), 2 if M > sublane_m else 1)
        tile_m = _round_up(_cdiv(M, n_m), sublane_m)
        Mp = _round_up(M, tile_m)
        n_m = Mp // tile_m

        # ---- pf_dim tiling: largest tile that fits the VMEM budget ---------
        def footprint(tp, np_):
            w_buf = 1 if np_ == 1 else 2                       # buffer count
            w = w_buf * (2 * Hp * tp * itemsize + tp * 4) + Hp * 4
            xb = 2 * tile_m * Hp * itemsize                    # x double-buf
            ob = 2 * tile_m * Hp * out_itemsize                # out double-buf
            acc = tile_m * Hp * 4 if np_ > 1 else 0            # f32 scratch
            tmp = tile_m * tp * 4 + tile_m * Hp * 4            # h / out temps
            return w + xb + ob + acc + tmp

        if tile_p_fixed is not None:
            tile_p = tile_p_fixed
            n_p = Pp // tile_p
        else:
            n_units = Pp // 128
            tile_p, n_p = 128, n_units                         # fallback
            for cand in range(1, n_units + 1):
                if n_units % cand:
                    continue
                tp = (n_units // cand) * 128
                if footprint(tp, cand) <= budget:
                    tile_p, n_p = tp, cand
                    break

        needed = footprint(tile_p, n_p)
        vmem_limit = int(min(limit_cap, max(needed * 5 // 4, 32 * 1024 * 1024)))

        # ---- per-call activation prep (skipped when already aligned) -------
        x2d = x.reshape(M, H)
        if x2d.dtype != np.dtype(cdt):
            x2d = x2d.astype(cdt)
        if (Mp, Hp) != (M, H):
            x2d = jnp.pad(x2d, ((0, Mp - M), (0, Hp - H)))

        if n_p == 1:
            kernel = _ffn_kernel_resident
            in_specs = [
                pl.BlockSpec((tile_m, Hp), lambda i, p: (i, 0)),   # x: streamed
                _block_spec((Hp, Pp), lambda i, p: (0, 0), buffers=1),  # W1
                _block_spec((1, Pp), lambda i, p: (0, 0), buffers=1),   # b1
                _block_spec((Pp, Hp), lambda i, p: (0, 0), buffers=1),  # W2
                _block_spec((1, Hp), lambda i, p: (0, 0), buffers=1),   # b2
            ]
            scratch_shapes = []
        else:
            kernel = _ffn_kernel_split
            in_specs = [
                pl.BlockSpec((tile_m, Hp), lambda i, p: (i, 0)),       # x
                pl.BlockSpec((Hp, tile_p), lambda i, p: (0, p)),       # W1 tile
                pl.BlockSpec((1, tile_p), lambda i, p: (0, p)),        # b1 tile
                pl.BlockSpec((tile_p, Hp), lambda i, p: (p, 0)),       # W2 tile
                _block_spec((1, Hp), lambda i, p: (0, 0), buffers=1),  # b2
            ]
            scratch_shapes = [pltpu.VMEM((tile_m, Hp), jnp.float32)]

        cost = pl.CostEstimate(
            flops=4 * M * H * P,            # two matmuls, unpadded footprint
            transcendentals=0,
            bytes_accessed=(M * H * itemsize + M * H * out_itemsize
                            + 2 * H * P * itemsize + (P + H) * 4),
        )

        out2d = pl.pallas_call(
            kernel,
            out_shape=jax.ShapeDtypeStruct((Mp, Hp), out_dtype),
            grid_spec=pltpu.PrefetchScalarGridSpec(
                num_scalar_prefetch=0,
                grid=(n_m, n_p),
                in_specs=in_specs,
                out_specs=pl.BlockSpec((tile_m, Hp), lambda i, p: (i, 0)),
                scratch_shapes=scratch_shapes,
            ),
            compiler_params=pltpu.CompilerParams(
                dimension_semantics=("parallel", "arbitrary"),
                vmem_limit_bytes=vmem_limit,
            ),
            cost_estimate=cost,
        )(x2d, w1p, b1p, w2p, b2p)

        if (Mp, Hp) != (M, H):
            out2d = out2d[:M, :H]
        return out2d.reshape(B, S, H)

    return apply


# ----------------------------- test -----------------------------------------

if __name__ == "__main__":
    # Small shapes consistent with the module: batch=2, seq=8, hidden=32, pf=64.
    batch, seq, hidden_dim, pf_dim = 2, 8, 32, 64

    key = jax.random.PRNGKey(0)
    kx, k1, kb1, k2, kb2 = jax.random.split(key, 5)

    x = jax.random.normal(kx, (batch, seq, hidden_dim), dtype=jnp.float32)
    # Parameters stored as [in, out] (PyTorch W^T).
    w1 = jax.random.normal(k1, (hidden_dim, pf_dim), dtype=jnp.float32) * 0.1
    b1 = jax.random.normal(kb1, (pf_dim,), dtype=jnp.float32) * 0.1
    w2 = jax.random.normal(k2, (pf_dim, hidden_dim), dtype=jnp.float32) * 0.1
    b2 = jax.random.normal(kb2, (hidden_dim,), dtype=jnp.float32) * 0.1

    # Pure-JAX reference (eval-mode forward: dropout = identity).
    ref = jnp.maximum(x @ w1 + b1, 0.0) @ w2 + b2

    # 1) Exact f32 path.
    ffn_f32 = make_positionwise_ffn(w1, b1, w2, b2, compute_dtype=jnp.float32)
    out = jax.block_until_ready(ffn_f32(x))
    assert out.shape == (batch, seq, hidden_dim)
    assert jnp.allclose(out, ref, atol=1e-5, rtol=1e-5)

    # 2) Default MXU-native path: bf16 operands, f32 accumulation.
    ffn_bf16 = make_positionwise_ffn(w1, b1, w2, b2)
    out_bf16 = jax.block_until_ready(ffn_bf16(x))
    assert out_bf16.shape == (batch, seq, hidden_dim)
    assert jnp.allclose(out_bf16.astype(jnp.float32), ref, atol=5e-2, rtol=5e-2)

    # 3) Exercise the pf_dim-split accumulator path (forced small pf tile).
    pf_big = 256
    w1b = jax.random.normal(k1, (hidden_dim, pf_big), dtype=jnp.float32) * 0.1
    b1b = jax.random.normal(kb1, (pf_big,), dtype=jnp.float32) * 0.1
    w2b = jax.random.normal(k2, (pf_big, hidden_dim), dtype=jnp.float32) * 0.1
    ref_b = jnp.maximum(x @ w1b + b1b, 0.0) @ w2b + b2
    ffn_split = make_positionwise_ffn(w1b, b1b, w2b, b2,
                                      compute_dtype=jnp.float32, pf_tile=128)
    out_split = jax.block_until_ready(ffn_split(x))
    assert out_split.shape == (batch, seq, hidden_dim)
    assert jnp.allclose(out_split, ref_b, atol=1e-5, rtol=1e-5)

    print("KERNEL_OK")
</pallas_src>

<mosaic_0001>
module attributes {stable_mosaic.version = 11 : i64} {
  func.func @_ffn_kernel_resident(%arg0: i32, %arg1: i32, %arg2: memref<8x128xf32, #tpu.memory_space<vmem>>, %arg3: memref<128x128xf32, #tpu.memory_space<vmem>>, %arg4: memref<1x128xf32, #tpu.memory_space<vmem>>, %arg5: memref<128x128xf32, #tpu.memory_space<vmem>>, %arg6: memref<1x128xf32, #tpu.memory_space<vmem>>, %arg7: memref<8x128xf32, #tpu.memory_space<vmem>>) attributes {dimension_semantics = [#tpu.dimension_semantics<parallel>, #tpu.dimension_semantics<arbitrary>], iteration_bounds = array<i64: 2, 1>, scalar_prefetch = 0 : i64, scratch_operands = 0 : i64, tpu.core_type = #tpu.core_type<tc>, window_params = [{transform_indices = @transform_0, window_bounds = array<i64: 8, 128>}, {pipeline_mode = #tpu.pipeline_mode<synchronous>, transform_indices = @transform_1, window_bounds = array<i64: 128, 128>}, {pipeline_mode = #tpu.pipeline_mode<synchronous>, transform_indices = @transform_2, window_bounds = array<i64: 1, 128>}, {pipeline_mode = #tpu.pipeline_mode<synchronous>, transform_indices = @transform_3, window_bounds = array<i64: 128, 128>}, {pipeline_mode = #tpu.pipeline_mode<synchronous>, transform_indices = @transform_4, window_bounds = array<i64: 1, 128>}, {transform_indices = @transform_5, window_bounds = array<i64: 8, 128>}]} {
    %c0 = arith.constant 0 : index
    %c0_0 = arith.constant 0 : index
    %0 = vector.load %arg2[%c0, %c0_0] : memref<8x128xf32, #tpu.memory_space<vmem>>, vector<8x128xf32>
    %c0_1 = arith.constant 0 : index
    %c0_2 = arith.constant 0 : index
    %1 = vector.load %arg3[%c0_1, %c0_2] : memref<128x128xf32, #tpu.memory_space<vmem>>, vector<128x128xf32>
    %cst = arith.constant dense<0.000000e+00> : vector<8x128xf32>
    %2 = tpu.matmul %0, %1, %cst {dimension_numbers = #tpu.dot_dimension_numbers<[1], [0], [0], [1], [0, 0, 1, 1], [], []>} : vector<8x128xf32>, vector<128x128xf32>, vector<8x128xf32> -> vector<8x128xf32>
    %c0_3 = arith.constant 0 : index
    %c0_4 = arith.constant 0 : index
    %3 = vector.load %arg4[%c0_3, %c0_4] : memref<1x128xf32, #tpu.memory_space<vmem>>, vector<1x128xf32>
    %4 = vector.broadcast %3 : vector<1x128xf32> to vector<8x128xf32>
    %5 = arith.addf %2, %4 : vector<8x128xf32>
    %cst_5 = arith.constant 0.000000e+00 : f32
    %6 = vector.broadcast %cst_5 : f32 to vector<8x128xf32>
    %7 = arith.maximumf %5, %6 : vector<8x128xf32>
    %c0_6 = arith.constant 0 : index
    %c0_7 = arith.constant 0 : index
    %8 = vector.load %arg5[%c0_6, %c0_7] : memref<128x128xf32, #tpu.memory_space<vmem>>, vector<128x128xf32>
    %cst_8 = arith.constant dense<0.000000e+00> : vector<8x128xf32>
    %9 = tpu.matmul %7, %8, %cst_8 {dimension_numbers = #tpu.dot_dimension_numbers<[1], [0], [0], [1], [0, 0, 1, 1], [], []>} : vector<8x128xf32>, vector<128x128xf32>, vector<8x128xf32> -> vector<8x128xf32>
    %c0_9 = arith.constant 0 : index
    %c0_10 = arith.constant 0 : index
    %10 = vector.load %arg6[%c0_9, %c0_10] : memref<1x128xf32, #tpu.memory_space<vmem>>, vector<1x128xf32>
    %11 = vector.broadcast %10 : vector<1x128xf32> to vector<8x128xf32>
    %12 = arith.addf %9, %11 : vector<8x128xf32>
    %c0_11 = arith.constant 0 : index
    %c0_12 = arith.constant 0 : index
    %13 = vector.load %arg7[%c0_11, %c0_12] : memref<8x128xf32, #tpu.memory_space<vmem>>, vector<8x128xf32>
    tpu.vector_store %arg7[%c0_11, %c0_12], %12 {strides = array<i32>} : memref<8x128xf32, #tpu.memory_space<vmem>>, vector<8x128xf32>,
    return
  }
  func.func @transform_0(%arg0: i32, %arg1: i32) -> (i32, i32) {
    %c0_i32 = arith.constant 0 : i32
    %c0_i32_0 = arith.constant 0 : i32
    return %arg0, %c0_i32 : i32, i32
  }
  func.func @transform_1(%arg0: i32, %arg1: i32) -> (i32, i32) {
    %c0_i32 = arith.constant 0 : i32
    %c0_i32_0 = arith.constant 0 : i32
    %c0_i32_1 = arith.constant 0 : i32
    return %c0_i32, %c0_i32_0 : i32, i32
  }
  func.func @transform_2(%arg0: i32, %arg1: i32) -> (i32, i32) {
    %c0_i32 = arith.constant 0 : i32
    %c0_i32_0 = arith.constant 0 : i32
    %c0_i32_1 = arith.constant 0 : i32
    return %c0_i32, %c0_i32_0 : i32, i32
  }
  func.func @transform_3(%arg0: i32, %arg1: i32) -> (i32, i32) {
    %c0_i32 = arith.constant 0 : i32
    %c0_i32_0 = arith.constant 0 : i32
    %c0_i32_1 = arith.constant 0 : i32
    return %c0_i32, %c0_i32_0 : i32, i32
  }
  func.func @transform_4(%arg0: i32, %arg1: i32) -> (i32, i32) {
    %c0_i32 = arith.constant 0 : i32
    %c0_i32_0 = arith.constant 0 : i32
    %c0_i32_1 = arith.constant 0 : i32
    return %c0_i32, %c0_i32_0 : i32, i32
  }
  func.func @transform_5(%arg0: i32, %arg1: i32) -> (i32, i32) {
    %c0_i32 = arith.constant 0 : i32
    %c0_i32_0 = arith.constant 0 : i32
    return %arg0, %c0_i32 : i32, i32
  }
}

</mosaic_0001>

<bundles_post_ra>
// kernel: apply.1
= control target key start
LH: loop header
LB: loop body
LE: loop exit
PB: predicated region body
PF: predicated region fallthrough
CT: control target
= control target key end

     0   :  { %10 = vsyncpa [#allocation3], 0  ;;  %s949_s0 = inlined_call_operand.vmem [shape: f32[16,128], index: 0, kind: input, shape index: {}]   ;;  %s950_s1 = inlined_call_operand.hbm [shape: f32[128,128], index: 1, kind: input, shape index: {}]   ;;  %s951_s2 = inlined_call_operand.vmem [shape: f32[1,128], index: 2, kind: input, shape index: {}]   ;;  %s952_s3 = inlined_call_operand.hbm [shape: f32[128,128], index: 3, kind: input, shape index: {}]   ;;  %s953_s4 = inlined_call_operand.vmem [shape: f32[1,128], index: 4, kind: input, shape index: {}]   ;;  %s954_s5 = inlined_call_operand.vmem [shape: f32[16,128], index: 5, kind: output, shape index: {}]  }
   0x1   :  { %11 = vsyncpa [#allocation5], 0  ;;  %s820_s18 = smov 0   ;;  %s822_s19 = smov 0  }
   0x2   :  { %s824_s20 = smov 0  }
   0x3 LB: > { %s532_s21 = sadd.s32 4294967295, %s782_s20   ;;  %s29_s22 = sadd.s32 1, %s778_s19  ;;  %s782_s20 = sphi %s824_s20, %s17_s20   ;;  %s778_s19 = sphi %s822_s19, %s959_s19   ;;  %s774_s18 = sphi %s820_s18, %s958_s18  }
   0x4   : > { %p31_p0 = scmp.ge.s32.totalorder %s29_s22, 2  ;;  %p534_p1 = scmp.ge.s32.totalorder %s782_s20, 1 }
   0x5   : > { %p170_p2 = scmp.lt.s32.totalorder %s782_s20, 3  ;;  %p845_p4 = scmp.eq.s32.totalorder %s532_s21, 0 }
   0x6   : > { %s961_s22 = smov (%p31_p0, %s29_s22), 0  ;;  %s784_s25 = smov [#allocation2]  }
   0x7   : > { %p841_p3 = pnand %p534_p1, %p170_p2  ;;  %s182_s26 = sshll.u32 %s784_s25, 4  ;;  %s183_s26 = int_to_ptr.vmem [resolvable:$true] %s182_s26 }
   0x8   : > { %s785_s28 = smov [#allocation4]   ;;  %s711_s30 = scalar_lea.vmem %s183_s26, 2048 }
   0x9   : > { %p659_p5 = pneg %p841_p3  ;;  %s198_s29 = sshll.u32 %s785_s28, 4  ;;  %s199_s29 = int_to_ptr.vmem [resolvable:$true] %s198_s29 }
   0xa   : > { %p712_p8 = scmp.ne.s32.totalorder %s183_s26, %s711_s30  ;;  %p719_p11 = scmp.lt.s32.totalorder %s183_s26, %s183_s26 }
   0xb   : > { %p853_p6 = pnand %p845_p4, %p659_p5  ;;  %p720_p12 = scmp.lt.s32.totalorder %s711_s30, %s711_s30 }
   0xd   : > { %p702_p7 = pneg %p853_p6  ;;  %p721_p13 = por %p720_p12, %p719_p11 }
   0xf   : > { %p714_p9 = pnand %p712_p8, %p702_p7 }
  0x11   : > { %p715_p10 = pneg %p714_p9 }
  0x13   : > { %p722_p0 = pnand %p721_p13, %p715_p10 }
  0x15   : > { %725 = shalt.err (!%p722_p0)
}
  0x16   : > { %s786_s6 = smov 128   ;;  %s787_s7 = smov 8  }
  0x17   : > { %662 = dma.hbm_to_vmem [thread:$0]  (!%p853_p6), %s950_s1, 2048, %s183_s26, [#allocation3], %s786_s6, %s786_s6, %s787_s7  }
  0x18   : > { %s737_s10 = scalar_lea.vmem %s199_s29, 2048  ;;  %p745_p8 = scmp.lt.s32.totalorder %s199_s29, %s199_s29 }
  0x19   : > { %p738_p1 = scmp.ne.s32.totalorder %s199_s29, %s737_s10  ;;  %p746_p9 = scmp.lt.s32.totalorder %s737_s10, %s737_s10 }
  0x1b   : > { %p740_p2 = pnand %p738_p1, %p702_p7  ;;  %p747_p11 = por %p746_p9, %p745_p8 }
  0x1d   : > { %p741_p5 = pneg %p740_p2 }
  0x1f   : > { %p748_p10 = pnand %p747_p11, %p741_p5 }
  0x21   : > { %751 = shalt.err (!%p748_p10)
}
  0x22   : > { %665 = dma.hbm_to_vmem [thread:$0]  (!%p853_p6), %s952_s3, 2048, %s199_s29, [#allocation5], %s786_s6, %s786_s6, %s787_s7  }
  0x23   : > { %224 = sbr.rel (%p841_p3) target bundleno = 470 (0x1d6), region = 40 }
  0x28   : > { %765 = dma.done.wait (%p845_p4), [#allocation3], 2048  }
  0x29   : > { %767 = vsyncadd (%p845_p4), [#allocation3], 4294965248 }
  0x2a   : > { %769 = dma.done.wait (%p845_p4), [#allocation5], 2048  }
  0x2b   : > { %771 = vsyncadd (%p845_p4), [#allocation5], 4294965248  ;;  %v788_v0 = vmov 0.0   ;;  %vm789_vm0 = vmmov 0   ;;  %v278_v1 = vld [vmem:[#allocation2 + $0x78] sm:$0xff]  ;;  %v277_v2 = vld [vmem:[#allocation2 + $0x70] sm:$0xff] }
  0x2c   : > { %581 = vmatprep.subr.mxu0 %v788_v0  ;;  %613 = vmatprep.mubr.msk.f32.mxu0 %vm789_vm0, %v788_v0  ;;  %v276_v3 = vld [vmem:[#allocation2 + $0x68] sm:$0xff]  ;;  %v275_v4 = vld [vmem:[#allocation2 + $0x60] sm:$0xff]  ;;  %v372_v5 = vld [vmem:[#allocation4 + $0x78] sm:$0xff]  ;;  %p254_p3 = scmp.lt.s32.totalorder %s774_s18, 1 }
  0x2d   : > { %616 = vmatprep.subr.mxu1 %v788_v0  ;;  %648 = vmatprep.mubr.msk.f32.mxu1 %vm789_vm0, %v788_v0  ;;  %v274_v6 = vld [vmem:[#allocation2 + $0x58] sm:$0xff]  ;;  %v371_v7 = vld [vmem:[#allocation4 + $0x70] sm:$0xff]  ;;  %v370_v8 = vld [vmem:[#allocation4 + $0x68] sm:$0xff] }
  0x2e   : > { %582 = vmatpush3.msra.mxu0 %v278_v1  ;;  %617 = vmatpush3.msra.mxu1 %v372_v5  ;;  %v273_v9 = vld [vmem:[#allocation2 + $0x50] sm:$0xff]  ;;  %v369_v10 = vld [vmem:[#allocation4 + $0x60] sm:$0xff]  ;;  %v272_v11 = vld [vmem:[#allocation2 + $0x48] sm:$0xff]  ;;  %s963_s18 = smov (!%p254_p3, %s774_s18), 1 }
  0x2f   : > { %583 = vmatprep.subr.mxu0 %v788_v0  ;;  %618 = vmatprep.subr.mxu1 %v788_v0  ;;  %v368_v12 = vld [vmem:[#allocation4 + $0x58] sm:$0xff]  ;;  %v271_v13 = vld [vmem:[#allocation2 + $0x40] sm:$0xff]  ;;  %v367_v14 = vld [vmem:[#allocation4 + $0x50] sm:$0xff]  ;;  %s541_s13 = sshll.u32 %s963_s18, 3 }
  0x30   : > { %584 = vmatpush3.msra.mxu0 %v277_v2  ;;  %619 = vmatpush3.msra.mxu1 %v371_v7  ;;  %v270_v15 = vld [vmem:[#allocation2 + $0x38] sm:$0xff]  ;;  %v366_v16 = vld [vmem:[#allocation4 + $0x48] sm:$0xff]  ;;  %v269_v17 = vld [vmem:[#allocation2 + $0x30] sm:$0xff]  ;;  %s257_s16 = scalar_lea.vmem %s949_s0, %s541_s13  ;;  %s261_s27 = scalar_lea.vmem %s954_s5, %s541_s13 }
  0x31   : > { %585 = vmatprep.subr.mxu0 %v788_v0  ;;  %620 = vmatprep.subr.mxu1 %v788_v0  ;;  %v365_v18 = vld [vmem:[#allocation4 + $0x40] sm:$0xff]  ;;  %v268_v19 = vld [vmem:[#allocation2 + $0x28] sm:$0xff]  ;;  %v364_v20 = vld [vmem:[#allocation4 + $0x38] sm:$0xff] }
  0x32   : > { %586 = vmatpush3.msra.mxu0 %v276_v3  ;;  %621 = vmatpush3.msra.mxu1 %v370_v8  ;;  %v267_v21 = vld [vmem:[#allocation2 + $0x20] sm:$0xff]  ;;  %v363_v22 = vld [vmem:[#allocation4 + $0x30] sm:$0xff]  ;;  %v266_v23 = vld [vmem:[#allocation2 + $0x18] sm:$0xff] }
  0x33   : > { %587 = vmatprep.subr.mxu0 %v788_v0  ;;  %622 = vmatprep.subr.mxu1 %v788_v0  ;;  %v362_v24 = vld [vmem:[#allocation4 + $0x28] sm:$0xff]  ;;  %v265_v25 = vld [vmem:[#allocation2 + $0x10] sm:$0xff]  ;;  %v361_v26 = vld [vmem:[#allocation4 + $0x20] sm:$0xff] }
  0x34   : > { %588 = vmatpush3.msra.mxu0 %v275_v4  ;;  %623 = vmatpush3.msra.mxu1 %v369_v10  ;;  %v264_v27 = vld [vmem:[#allocation2 + $0x8] sm:$0xff]  ;;  %v360_v28 = vld [vmem:[#allocation4 + $0x18] sm:$0xff]  ;;  %v263_v29 = vld [vmem:[#allocation2] sm:$0xff] }
  0x35   : > { %589 = vmatprep.subr.mxu0 %v788_v0  ;;  %624 = vmatprep.subr.mxu1 %v788_v0  ;;  %v262_v30 = vld [vmem:[%s257_s16] sm:$0xff]  ;;  %v359_v31 = vld [vmem:[#allocation4 + $0x10] sm:$0xff]  ;;  %v358_v32 = vld [vmem:[#allocation4 + $0x8] sm:$0xff] }
  0x36   : > { %590 = vmatpush3.msra.mxu0 %v274_v6  ;;  %625 = vmatpush3.msra.mxu1 %v368_v12  ;;  %v357_v33 = vld [vmem:[#allocation4] sm:$0xff] }
  0x37   : > { %591 = vmatprep.subr.mxu0 %v788_v0  ;;  %626 = vmatprep.subr.mxu1 %v788_v0  ;;  %v543_v34 = vld [vmem:[%s951_s2] ss:$0 sm:$0xff] }
  0x38   : > { %592 = vmatpush3.msra.mxu0 %v273_v9  ;;  %627 = vmatpush3.msra.mxu1 %v367_v14  ;;  %v544_v39 = vld [vmem:[%s953_s4] ss:$0 sm:$0xff] }
  0x39   : > { %593 = vmatprep.subr.mxu0 %v788_v0  ;;  %628 = vmatprep.subr.mxu1 %v788_v0 }
  0x3a   : > { %594 = vmatpush3.msra.mxu0 %v272_v11  ;;  %629 = vmatpush3.msra.mxu1 %v366_v16 }
  0x3b   : > { %595 = vmatprep.subr.mxu0 %v788_v0  ;;  %630 = vmatprep.subr.mxu1 %v788_v0 }
  0x3c   : > { %596 = vmatpush3.msra.mxu0 %v271_v13  ;;  %631 = vmatpush3.msra.mxu1 %v365_v18 }
  0x3d   : > { %597 = vmatprep.subr.mxu0 %v788_v0  ;;  %632 = vmatprep.subr.mxu1 %v788_v0 }
  0x3e   : > { %598 = vmatpush3.msra.mxu0 %v270_v15  ;;  %633 = vmatpush3.msra.mxu1 %v364_v20 }
  0x3f   : > { %599 = vmatprep.subr.mxu0 %v788_v0  ;;  %634 = vmatprep.subr.mxu1 %v788_v0 }
  0x40   : > { %600 = vmatpush3.msra.mxu0 %v269_v17  ;;  %635 = vmatpush3.msra.mxu1 %v363_v22 }
  0x41   : > { %601 = vmatprep.subr.mxu0 %v788_v0  ;;  %636 = vmatprep.subr.mxu1 %v788_v0 }
  0x42   : > { %602 = vmatpush3.msra.mxu0 %v268_v19  ;;  %637 = vmatpush3.msra.mxu1 %v362_v24 }
  0x43   : > { %603 = vmatprep.subr.mxu0 %v788_v0  ;;  %638 = vmatprep.subr.mxu1 %v788_v0 }
  0x44   : > { %604 = vmatpush3.msra.mxu0 %v267_v21  ;;  %639 = vmatpush3.msra.mxu1 %v361_v26 }
  0x45   : > { %605 = vmatprep.subr.mxu0 %v788_v0  ;;  %640 = vmatprep.subr.mxu1 %v788_v0 }
  0x46   : > { %606 = vmatpush3.msra.mxu0 %v266_v23  ;;  %641 = vmatpush3.msra.mxu1 %v360_v28 }
  0x47   : > { %607 = vmatprep.subr.mxu0 %v788_v0  ;;  %642 = vmatprep.subr.mxu1 %v788_v0 }
  0x48   : > { %608 = vmatpush3.msra.mxu0 %v265_v25  ;;  %643 = vmatpush3.msra.mxu1 %v359_v31 }
  0x49   : > { %609 = vmatprep.subr.mxu0 %v788_v0  ;;  %644 = vmatprep.subr.mxu1 %v788_v0 }
  0x4a   : > { %610 = vmatpush3.msra.mxu0 %v264_v27  ;;  %645 = vmatpush3.msra.mxu1 %v358_v32 }
  0x4b   : > { %611 = vmatprep.subr.mxu0 %v788_v0  ;;  %646 = vmatprep.subr.mxu1 %v788_v0 }
  0x4c   : > { %612 = vmatpush3.msra.mxu0 %v263_v29  ;;  %647 = vmatpush3.msra.mxu1 %v357_v33 }
  0x4d   : > { %614 = vmatmul.mubr.f32.vlgmr.msra.gmra.mxu0 %v262_v30 }
 0x10d   : > { %v352_v35 = vpop.f32.mrf.mxu0 }
 0x10e   : > { %v353_v36 = vadd.f32 %v543_v34, %v352_v35 }
 0x10f   : > { %v615_v37 = vpop.f32.mrf.mxu0 }
 0x110   : > { %v356_v38 = vmax.f32 %v353_v36, 0.0 }
 0x112   : > { %649 = vmatmul.mubr.f32.vlgmr.msra.gmra.mxu1 %v356_v38 }
 0x1d2   : > { %v446_v40 = vpop.f32.mrf.mxu1 }
 0x1d3   : > { %v447_v41 = vadd.f32 %v544_v39, %v446_v40 }
 0x1d4   : > { %v650_v42 = vpop.f32.mrf.mxu1 }
 0x1d5   : > { %450 = vst [vmem:[%s261_s27] sm:$0xff] %v447_v41 }
 0x1d6 PF: > { %s17_s20 = sadd.s32 1, %s782_s20   ;;  %s958_s18 = smov %s778_s19 }
 0x1d7   : > { %p14_p4 = scmp.ge.s32.totalorder %s17_s20, 4   ;;  %s959_s19 = smov %s961_s22 }
 0x1d9   :  { %16 = sbr.rel (!%p14_p4) target bundleno = 3 (0x3), region = 79 }
 0x1de   :  { %470 = vsyncpa [#allocation3], 1 }
 0x1df   :  { %472 = vsyncpa [#allocation3 + $0x1], 1 }
 0x1e0   :  { %473 = vsyncpa [#allocation5], 1 }

</bundles_post_ra>
